<compile_context>
chip_gen: v7x
topology: tpu7x:2x2x1
jax: 0.10.0
libtpu: 0.0.40
codegen_flags: <defaults>
</compile_context>

<pallas_src>
import functools

import jax
import jax.numpy as jnp
from jax import lax
from jax.experimental import pallas as pl
from jax.experimental.pallas import tpu as pltpu

ALPHA = 0.1
TEMP = 1.0
IGNORE_INDEX = -100

# Absolute lane cap: keeps per-op vreg unrolling / compile time bounded while
# still allowing multi-MiB pred blocks even for tiny C (old cap was 16384).
_MAX_LANES = 131072
# Conservative count of live (C, T) float32 compiler temps inside the body
# (bf16 inputs inflate 2x when cast to f32 in-register).
_N_F32_TEMPS = 7

# Per-generation VMEM budgeting: ws_budget bounds the estimated per-block
# working set (input double-buffers + f32 temps); vmem_limit is passed to the
# compiler so the big tiles fit (scoped defaults are only 16/32 MiB).
_GEN_PARAMS = {
    "v5e":     dict(ws_budget=64 << 20, vmem_limit=100 << 20),  # 128 MiB physical
    "v6e":     dict(ws_budget=64 << 20, vmem_limit=100 << 20),  # 128 MiB physical
    "v7x":     dict(ws_budget=28 << 20, vmem_limit=48 << 20),   # 64 MiB physical
    "unknown": dict(ws_budget=8 << 20,  vmem_limit=None),
}


def _tpu_generation():
    try:
        kind = jax.devices()[0].device_kind.lower()
    except Exception:
        return "unknown"
    if "v7" in kind or "7x" in kind:
        return "v7x"
    if "v6" in kind:
        return "v6e"
    if "v5" in kind or "v4" in kind:
        return "v5e"          # 128 MiB-VMEM class (v4 / v5e / v5p)
    return "unknown"


def _fold_lanes(x):
    """Sum the 128-lane tiles of x: (R, T) with T % 128 == 0 -> (R, 128).

    Pairwise halving with lane-tile-aligned static slices: O(log(T/128)) traced
    ops, all plain VPU vreg adds (no XLU lane reduce, no relayout)."""
    t = x.shape[-1]
    rem = None
    while t > 128:
        ntiles = t // 128
        if ntiles % 2 == 1:                       # peel the odd tail tile
            tail = x[:, (ntiles - 1) * 128:]
            rem = tail if rem is None else rem + tail
            x = x[:, :(ntiles - 1) * 128]
        else:
            half = (ntiles // 2) * 128
            x = x[:, :half] + x[:, half:]
        t = x.shape[-1]
    return x if rem is None else x + rem


def _loss_kernel(pred_ref, lab_ref, pm_ref, tm_ref, sc_ref,
                 ce_acc, cnt_acc, pm_acc, tm_acc,
                 *, inv_temp, ignore_index):
    k = pl.program_id(2)

    @pl.when(k == 0)
    def _init():
        ce_acc[...] = jnp.zeros_like(ce_acc)
        cnt_acc[...] = jnp.zeros_like(cnt_acc)
        pm_acc[...] = jnp.zeros_like(pm_acc)
        tm_acc[...] = jnp.zeros_like(tm_acc)

    logits = pred_ref[0].astype(jnp.float32)            # (C, T), cast in-register
    lbl = lab_ref[0]                                    # (1, T) int32
    C, _ = logits.shape

    validf = (lbl != ignore_index).astype(jnp.float32)  # (1, T)

    # (C, 1) iota broadcast against the (1, T) label: no full (C, T) int32 iota
    # is materialized.  ignore_index is never a valid class id (checked in the
    # wrapper), so `matchf` already implies "valid pixel".
    class_ids = lax.broadcasted_iota(jnp.int32, (C, 1), 0)
    matchf = (class_ids == lbl).astype(jnp.float32)     # (C, T)

    # ---- cross entropy: log-softmax over the class (sublane) axis ----
    m = jnp.max(logits, axis=0, keepdims=True)          # (1, T)
    shifted = logits - m                                # (C, T)
    ex = jnp.exp(shifted)                               # (C, T)
    z = jnp.sum(ex, axis=0, keepdims=True)              # (1, T)
    logz = m + jnp.log(z)                               # (1, T)
    picked = jnp.sum(logits * matchf, axis=0, keepdims=True)   # (1, T) = logits[label]
    ce_acc[...] += _fold_lanes((logz - picked) * validf)       # (1, 128)
    cnt_acc[...] += _fold_lanes(validf)                        # (1, 128)

    # ---- size term: per-class softmax mass over valid pixels ----
    if inv_temp == 1.0:
        et, zt = ex, z                                  # reuse the CE exp pass
    else:
        et = jnp.exp(shifted * inv_temp)                # reuse shifted logits
        zt = jnp.sum(et, axis=0, keepdims=True)
    # Fold the valid mask into the per-pixel 1/Z; approx reciprocal runs on the
    # otherwise-idle EUP slot.
    w = validf * pl.reciprocal(zt, approx=True)         # (1, T)
    pm_acc[...] += _fold_lanes(et * w)                  # (C, 128)
    tm_acc[...] += _fold_lanes(matchf)                  # (C, 128)

    @pl.when(k == pl.num_programs(2) - 1)
    def _finalize():
        # Per-(image, split) partial sums; the tiny (N*S*C) reduction and the
        # |pred_size - true_size| L1 happen in JAX glue (required for the
        # dual-TensorCore split; numerically identical to the reference).
        pm_ref[0, 0] = pm_acc[...]
        tm_ref[0, 0] = tm_acc[...]
        sc_ref[0, 0, 0:1, :] = ce_acc[...]
        sc_ref[0, 0, 1:2, :] = cnt_acc[...]


def _choose_hw_tile(HW, C, in_itemsize, ws_budget, prefer_even_chunks=False):
    """Largest spatial tile T (multiple of 128, dividing HW on the common path)
    whose estimated in-kernel VMEM working set fits the generation budget."""
    bytes_per_lane = (2 * C * in_itemsize      # double-buffered pred block
                      + 2 * 4                  # double-buffered int32 label block
                      + _N_F32_TEMPS * C * 4)  # live f32 temps in the body
    t_cap = max(128, min(ws_budget // bytes_per_lane, _MAX_LANES) // 128 * 128)
    if HW % 128 != 0:
        # Rare ragged case -> the wrapper pads (one extra HBM copy).
        return min(t_cap, -(-HW // 128) * 128)
    hw_tiles = HW // 128
    cap_tiles = t_cap // 128
    best, best_even = 1, 0
    d = 1
    while d * d <= hw_tiles:
        if hw_tiles % d == 0:
            for cand in (d, hw_tiles // d):
                if cand <= cap_tiles:
                    if cand > best:
                        best = cand
                    if (hw_tiles // cand) % 2 == 0 and cand > best_even:
                        best_even = cand
        d += 1
    if prefer_even_chunks and best_even > 0:
        return 128 * best_even       # enables the dual-TensorCore split on v7x
    return 128 * best


def cross_entropy_with_size_l1_loss(pred_nchw, label_nhw, alpha=ALPHA, temp=TEMP,
                                    ignore_index=IGNORE_INDEX, hw_tile=None):
    N, C, H, W = pred_nchw.shape
    HW = H * W
    ignore_index = int(ignore_index)
    if 0 <= ignore_index < C:
        raise ValueError("ignore_index must not be a valid class id "
                         "(kernel builds the per-class match mask from the raw label)")

    gen = _tpu_generation()
    params = _GEN_PARAMS[gen]

    # pred stays in its native dtype (bf16 halves HBM traffic); the kernel casts
    # to f32 in-register after the DMA.  Labels stay int32: sub-32-bit label
    # blocks with a size-1 sublane dim are lowering-fragile, and label traffic
    # is already small relative to pred for realistic C.
    pred = pred_nchw.reshape(N, C, HW)
    label = label_nhw.reshape(N, 1, HW).astype(jnp.int32)
    itemsize = jnp.dtype(pred.dtype).itemsize

    # Dual-TensorCore split of the HW reduction on v7x when the batch alone
    # cannot keep both cores busy.
    want_split = (gen == "v7x") and (N % 2 == 1)

    if hw_tile is None:
        T = _choose_hw_tile(HW, C, itemsize, params["ws_budget"],
                            prefer_even_chunks=want_split)
    else:
        T = int(hw_tile)
        if T % 128 != 0:
            raise ValueError("hw_tile must be a multiple of 128")

    num_chunks = -(-HW // T)
    HW_pad = num_chunks * T
    if HW_pad != HW:
        # Fallback only (HW not a multiple of 128, or a user hw_tile that does
        # not divide HW): costs one extra HBM copy of pred.  The auto-chosen T
        # always divides HW on the common path, so this branch is never hit
        # for typical segmentation shapes.
        pad = HW_pad - HW
        pred = jnp.pad(pred, ((0, 0), (0, 0), (0, pad)))
        label = jnp.pad(label, ((0, 0), (0, 0), (0, pad)),
                        constant_values=ignore_index)   # padded pixels ignored

    S = 2 if (want_split and num_chunks % 2 == 0) else 1
    k_per = num_chunks // S

    kernel = functools.partial(_loss_kernel, inv_temp=1.0 / float(temp),
                               ignore_index=ignore_index)

    cp_kwargs = dict(dimension_semantics=("parallel", "parallel", "arbitrary"))
    if params["vmem_limit"] is not None:
        cp_kwargs["vmem_limit_bytes"] = int(params["vmem_limit"])

    pm_out, tm_out, sc_out = pl.pallas_call(
        kernel,
        out_shape=(
            jax.ShapeDtypeStruct((N, S, C, 128), jnp.float32),  # per-class softmax mass
            jax.ShapeDtypeStruct((N, S, C, 128), jnp.float32),  # per-class true mass
            jax.ShapeDtypeStruct((N, S, 2, 128), jnp.float32),  # row0: ce, row1: n_valid
        ),
        grid_spec=pltpu.PrefetchScalarGridSpec(
            num_scalar_prefetch=0,
            grid=(N, S, k_per),                                 # reduction axis last
            in_specs=[
                pl.BlockSpec((1, C, T), lambda n, s, k: (n, 0, s * k_per + k)),
                pl.BlockSpec((1, 1, T), lambda n, s, k: (n, 0, s * k_per + k)),
            ],
            out_specs=[
                pl.BlockSpec((1, 1, C, 128), lambda n, s, k: (n, s, 0, 0)),
                pl.BlockSpec((1, 1, C, 128), lambda n, s, k: (n, s, 0, 0)),
                pl.BlockSpec((1, 1, 2, 128), lambda n, s, k: (n, s, 0, 0)),
            ],
            scratch_shapes=[
                pltpu.VMEM((1, 128), jnp.float32),   # ce lane partials
                pltpu.VMEM((1, 128), jnp.float32),   # valid-count lane partials
                pltpu.VMEM((C, 128), jnp.float32),   # per-class softmax mass
                pltpu.VMEM((C, 128), jnp.float32),   # per-class true mass
            ],
        ),
        compiler_params=pltpu.CompilerParams(**cp_kwargs),
    )(pred, label)

    # Tiny (N*S*C)-sized batch-level reduction as JAX glue.
    pm = jnp.sum(pm_out, axis=(1, 3))                        # (N, C)
    tm = jnp.sum(tm_out, axis=(1, 3))                        # (N, C)
    ce_sum = jnp.sum(sc_out[:, :, 0, :])
    cnt_per_img = jnp.sum(sc_out[:, :, 1, :], axis=(1, 2))   # (N,)
    cnt = jnp.sum(cnt_per_img)

    n_valid = jnp.maximum(cnt_per_img, 1.0)[:, None]
    size_loss = jnp.mean(jnp.abs(pm / n_valid - tm / n_valid))  # F.l1_loss over (N, C)
    ce_loss = ce_sum / jnp.maximum(cnt, 1.0)     # PyTorch CE 'mean' over valid pixels
    return ce_loss + alpha * size_loss


def _reference_loss(pred_nchw, label_nhw, alpha=ALPHA, temp=TEMP,
                    ignore_index=IGNORE_INDEX):
    # Pure-JAX reference for correctness checking.
    N, C, H, W = pred_nchw.shape
    pred = pred_nchw.reshape(N, C, H * W).astype(jnp.float32)
    lbl = label_nhw.reshape(N, H * W)
    valid = lbl != ignore_index
    lbl_safe = jnp.where(valid, lbl, 0)
    logp = jax.nn.log_softmax(pred, axis=1)
    picked = jnp.take_along_axis(logp, lbl_safe[:, None, :], axis=1)[:, 0, :]
    ce = jnp.sum(-picked * valid) / jnp.maximum(jnp.sum(valid), 1)
    prob = jax.nn.softmax(pred / temp, axis=1) * valid[:, None, :]
    onehot = (jax.nn.one_hot(lbl_safe, C, axis=1) * valid[:, None, :])
    n_valid = jnp.maximum(jnp.sum(valid, axis=1), 1)[:, None]
    pred_size = jnp.sum(prob, axis=2) / n_valid
    true_size = jnp.sum(onehot, axis=2) / n_valid
    size = jnp.mean(jnp.abs(pred_size - true_size))
    return ce + alpha * size


if __name__ == "__main__":
    key = jax.random.PRNGKey(0)
    k1, k2, k3 = jax.random.split(key, 3)

    N, C, H, W = 2, 4, 16, 16
    pred = jax.random.normal(k1, (N, C, H, W), dtype=jnp.float32)
    label = jax.random.randint(k2, (N, H, W), 0, C, dtype=jnp.int32)
    # Sprinkle in some ignored pixels.
    ignore_mask = jax.random.uniform(k3, (N, H, W)) < 0.2
    label = jnp.where(ignore_mask, IGNORE_INDEX, label)

    ref = jax.block_until_ready(_reference_loss(pred, label))

    # Auto-tiled path (whole HW fits one tile; no padding, T divides HW).
    loss1 = jax.block_until_ready(cross_entropy_with_size_l1_loss(pred, label))
    # Tolerances account for the EUP approximate reciprocal in the size term.
    assert jnp.allclose(loss1, ref, atol=2e-4, rtol=2e-4), (loss1, ref)

    # Multi-chunk path: forces the HW tiling / lane-partial accumulator machinery.
    loss2 = jax.block_until_ready(
        cross_entropy_with_size_l1_loss(pred, label, hw_tile=128))
    assert jnp.allclose(loss2, ref, atol=2e-4, rtol=2e-4), (loss2, ref)

    # Native-bf16 input path (no wrapper upcast; kernel casts in-register).
    pred_bf16 = pred.astype(jnp.bfloat16)
    ref_bf16 = jax.block_until_ready(_reference_loss(pred_bf16, label))
    loss3 = jax.block_until_ready(
        cross_entropy_with_size_l1_loss(pred_bf16, label, hw_tile=128))
    assert jnp.allclose(loss3, ref_bf16, atol=1e-3, rtol=1e-3), (loss3, ref_bf16)

    print("KERNEL_OK")
</pallas_src>

<mosaic_0001>
module attributes {stable_mosaic.version = 11 : i64} {
  func.func @_loss_kernel(%arg0: i32, %arg1: i32, %arg2: i32, %arg3: memref<1x4x256xf32, #tpu.memory_space<vmem>>, %arg4: memref<1x1x256xi32, #tpu.memory_space<vmem>>, %arg5: memref<1x1x4x128xf32, #tpu.memory_space<vmem>>, %arg6: memref<1x1x4x128xf32, #tpu.memory_space<vmem>>, %arg7: memref<1x1x2x128xf32, #tpu.memory_space<vmem>>, %arg8: memref<1x128xf32, #tpu.memory_space<vmem>>, %arg9: memref<1x128xf32, #tpu.memory_space<vmem>>, %arg10: memref<4x128xf32, #tpu.memory_space<vmem>>, %arg11: memref<4x128xf32, #tpu.memory_space<vmem>>) attributes {dimension_semantics = [#tpu.dimension_semantics<parallel>, #tpu.dimension_semantics<parallel>, #tpu.dimension_semantics<arbitrary>], iteration_bounds = array<i64: 2, 1, 1>, scalar_prefetch = 0 : i64, scratch_operands = 4 : i64, tpu.core_type = #tpu.core_type<tc>, window_params = [{transform_indices = @transform_0, window_bounds = array<i64: 1, 4, 256>}, {transform_indices = @transform_1, window_bounds = array<i64: 1, 1, 256>}, {transform_indices = @transform_2, window_bounds = array<i64: 1, 1, 4, 128>}, {transform_indices = @transform_3, window_bounds = array<i64: 1, 1, 4, 128>}, {transform_indices = @transform_4, window_bounds = array<i64: 1, 1, 2, 128>}]} {
    %c0_i32 = arith.constant 0 : i32
    %0 = arith.cmpi eq, %arg2, %c0_i32 : i32
    %1 = arith.extui %0 : i1 to i32
    %c0_i32_0 = arith.constant 0 : i32
    %2 = arith.cmpi ne, %1, %c0_i32_0 : i32
    scf.if %2 {
      %cst_26 = arith.constant 0.000000e+00 : f32
      %62 = vector.broadcast %cst_26 : f32 to vector<1x128xf32>
      %c0_27 = arith.constant 0 : index
      %c0_28 = arith.constant 0 : index
      %63 = vector.load %arg8[%c0_27, %c0_28] : memref<1x128xf32, #tpu.memory_space<vmem>>, vector<1x128xf32>
      tpu.vector_store %arg8[%c0_27, %c0_28], %62 {strides = array<i32>} : memref<1x128xf32, #tpu.memory_space<vmem>>, vector<1x128xf32>,
      %cst_29 = arith.constant 0.000000e+00 : f32
      %64 = vector.broadcast %cst_29 : f32 to vector<1x128xf32>
      %c0_30 = arith.constant 0 : index
      %c0_31 = arith.constant 0 : index
      %65 = vector.load %arg9[%c0_30, %c0_31] : memref<1x128xf32, #tpu.memory_space<vmem>>, vector<1x128xf32>
      tpu.vector_store %arg9[%c0_30, %c0_31], %64 {strides = array<i32>} : memref<1x128xf32, #tpu.memory_space<vmem>>, vector<1x128xf32>,
      %cst_32 = arith.constant 0.000000e+00 : f32
      %66 = vector.broadcast %cst_32 : f32 to vector<4x128xf32>
      %c0_33 = arith.constant 0 : index
      %c0_34 = arith.constant 0 : index
      %67 = vector.load %arg10[%c0_33, %c0_34] : memref<4x128xf32, #tpu.memory_space<vmem>>, vector<4x128xf32>
      tpu.vector_store %arg10[%c0_33, %c0_34], %66 {strides = array<i32>} : memref<4x128xf32, #tpu.memory_space<vmem>>, vector<4x128xf32>,
      %cst_35 = arith.constant 0.000000e+00 : f32
      %68 = vector.broadcast %cst_35 : f32 to vector<4x128xf32>
      %c0_36 = arith.constant 0 : index
      %c0_37 = arith.constant 0 : index
      %69 = vector.load %arg11[%c0_36, %c0_37] : memref<4x128xf32, #tpu.memory_space<vmem>>, vector<4x128xf32>
      tpu.vector_store %arg11[%c0_36, %c0_37], %68 {strides = array<i32>} : memref<4x128xf32, #tpu.memory_space<vmem>>, vector<4x128xf32>,
    } else {
    }
    %c0 = arith.constant 0 : index
    %c0_1 = arith.constant 0 : index
    %c0_2 = arith.constant 0 : index
    %3 = vector.load %arg3[%c0, %c0_1, %c0_2] : memref<1x4x256xf32, #tpu.memory_space<vmem>>, vector<1x4x256xf32>
    %4 = vector.shape_cast %3 : vector<1x4x256xf32> to vector<4x256xf32>
    %c0_3 = arith.constant 0 : index
    %c0_4 = arith.constant 0 : index
    %c0_5 = arith.constant 0 : index
    %5 = vector.load %arg4[%c0_3, %c0_4, %c0_5] : memref<1x1x256xi32, #tpu.memory_space<vmem>>, vector<1x1x256xi32>
    %6 = vector.shape_cast %5 : vector<1x1x256xi32> to vector<1x256xi32>
    %c-100_i32 = arith.constant -100 : i32
    %7 = vector.broadcast %c-100_i32 : i32 to vector<1x256xi32>
    %8 = arith.cmpi ne, %6, %7 : vector<1x256xi32>
    %9 = arith.extui %8 : vector<1x256xi1> to vector<1x256xi32>
    %10 = arith.sitofp %9 : vector<1x256xi32> to vector<1x256xf32>
    %11 = tpu.iota {dimensions = array<i32: 0>} : vector<4x1xi32>
    %12 = vector.broadcast %11 : vector<4x1xi32> to vector<4x256xi32>
    %13 = vector.broadcast %6 : vector<1x256xi32> to vector<4x256xi32>
    %14 = arith.cmpi eq, %12, %13 : vector<4x256xi32>
    %15 = arith.extui %14 : vector<4x256xi1> to vector<4x256xi32>
    %16 = arith.sitofp %15 : vector<4x256xi32> to vector<4x256xf32>
    %cst = arith.constant dense<0xFF800000> : vector<256xf32>
    %17 = vector.multi_reduction <maximumf>, %4, %cst [0] : vector<4x256xf32> to vector<256xf32>
    %18 = vector.shape_cast %17 : vector<256xf32> to vector<1x256xf32>
    %19 = vector.broadcast %18 : vector<1x256xf32> to vector<4x256xf32>
    %20 = arith.subf %4, %19 : vector<4x256xf32>
    %21 = math.exp %20 : vector<4x256xf32>
    %cst_6 = arith.constant dense<0.000000e+00> : vector<256xf32>
    %22 = vector.multi_reduction <add>, %21, %cst_6 [0] : vector<4x256xf32> to vector<256xf32>
    %23 = vector.shape_cast %22 : vector<256xf32> to vector<1x256xf32>
    %24 = math.log %23 : vector<1x256xf32>
    %25 = arith.addf %18, %24 : vector<1x256xf32>
    %26 = arith.mulf %4, %16 : vector<4x256xf32>
    %cst_7 = arith.constant dense<0.000000e+00> : vector<256xf32>
    %27 = vector.multi_reduction <add>, %26, %cst_7 [0] : vector<4x256xf32> to vector<256xf32>
    %28 = vector.shape_cast %27 : vector<256xf32> to vector<1x256xf32>
    %c0_8 = arith.constant 0 : index
    %c0_9 = arith.constant 0 : index
    %29 = vector.load %arg8[%c0_8, %c0_9] : memref<1x128xf32, #tpu.memory_space<vmem>>, vector<1x128xf32>
    %30 = arith.subf %25, %28 : vector<1x256xf32>
    %31 = arith.mulf %30, %10 : vector<1x256xf32>
    %32 = vector.extract_strided_slice %31 {offsets = [0, 0], sizes = [1, 128], strides = [1, 1]} : vector<1x256xf32> to vector<1x128xf32>
    %33 = vector.extract_strided_slice %31 {offsets = [0, 128], sizes = [1, 128], strides = [1, 1]} : vector<1x256xf32> to vector<1x128xf32>
    %34 = arith.addf %32, %33 : vector<1x128xf32>
    %35 = arith.addf %29, %34 : vector<1x128xf32>
    %c0_10 = arith.constant 0 : index
    %c0_11 = arith.constant 0 : index
    %36 = vector.load %arg8[%c0_10, %c0_11] : memref<1x128xf32, #tpu.memory_space<vmem>>, vector<1x128xf32>
    tpu.vector_store %arg8[%c0_10, %c0_11], %35 {strides = array<i32>} : memref<1x128xf32, #tpu.memory_space<vmem>>, vector<1x128xf32>,
    %c0_12 = arith.constant 0 : index
    %c0_13 = arith.constant 0 : index
    %37 = vector.load %arg9[%c0_12, %c0_13] : memref<1x128xf32, #tpu.memory_space<vmem>>, vector<1x128xf32>
    %38 = vector.extract_strided_slice %10 {offsets = [0, 0], sizes = [1, 128], strides = [1, 1]} : vector<1x256xf32> to vector<1x128xf32>
    %39 = vector.extract_strided_slice %10 {offsets = [0, 128], sizes = [1, 128], strides = [1, 1]} : vector<1x256xf32> to vector<1x128xf32>
    %40 = arith.addf %38, %39 : vector<1x128xf32>
    %41 = arith.addf %37, %40 : vector<1x128xf32>
    %c0_14 = arith.constant 0 : index
    %c0_15 = arith.constant 0 : index
    %42 = vector.load %arg9[%c0_14, %c0_15] : memref<1x128xf32, #tpu.memory_space<vmem>>, vector<1x128xf32>
    tpu.vector_store %arg9[%c0_14, %c0_15], %41 {strides = array<i32>} : memref<1x128xf32, #tpu.memory_space<vmem>>, vector<1x128xf32>,
    %43 = tpu.reciprocal %23 {approx = true} : vector<1x256xf32> -> vector<1x256xf32>
    %44 = arith.mulf %10, %43 : vector<1x256xf32>
    %c0_16 = arith.constant 0 : index
    %c0_17 = arith.constant 0 : index
    %45 = vector.load %arg10[%c0_16, %c0_17] : memref<4x128xf32, #tpu.memory_space<vmem>>, vector<4x128xf32>
    %46 = vector.broadcast %44 : vector<1x256xf32> to vector<4x256xf32>
    %47 = arith.mulf %21, %46 : vector<4x256xf32>
    %48 = vector.extract_strided_slice %47 {offsets = [0, 0], sizes = [4, 128], strides = [1, 1]} : vector<4x256xf32> to vector<4x128xf32>
    %49 = vector.extract_strided_slice %47 {offsets = [0, 128], sizes = [4, 128], strides = [1, 1]} : vector<4x256xf32> to vector<4x128xf32>
    %50 = arith.addf %48, %49 : vector<4x128xf32>
    %51 = arith.addf %45, %50 : vector<4x128xf32>
    %c0_18 = arith.constant 0 : index
    %c0_19 = arith.constant 0 : index
    %52 = vector.load %arg10[%c0_18, %c0_19] : memref<4x128xf32, #tpu.memory_space<vmem>>, vector<4x128xf32>
    tpu.vector_store %arg10[%c0_18, %c0_19], %51 {strides = array<i32>} : memref<4x128xf32, #tpu.memory_space<vmem>>, vector<4x128xf32>,
    %c0_20 = arith.constant 0 : index
    %c0_21 = arith.constant 0 : index
    %53 = vector.load %arg11[%c0_20, %c0_21] : memref<4x128xf32, #tpu.memory_space<vmem>>, vector<4x128xf32>
    %54 = vector.extract_strided_slice %16 {offsets = [0, 0], sizes = [4, 128], strides = [1, 1]} : vector<4x256xf32> to vector<4x128xf32>
    %55 = vector.extract_strided_slice %16 {offsets = [0, 128], sizes = [4, 128], strides = [1, 1]} : vector<4x256xf32> to vector<4x128xf32>
    %56 = arith.addf %54, %55 : vector<4x128xf32>
    %57 = arith.addf %53, %56 : vector<4x128xf32>
    %c0_22 = arith.constant 0 : index
    %c0_23 = arith.constant 0 : index
    %58 = vector.load %arg11[%c0_22, %c0_23] : memref<4x128xf32, #tpu.memory_space<vmem>>, vector<4x128xf32>
    tpu.vector_store %arg11[%c0_22, %c0_23], %57 {strides = array<i32>} : memref<4x128xf32, #tpu.memory_space<vmem>>, vector<4x128xf32>,
    %c0_i32_24 = arith.constant 0 : i32
    %59 = arith.cmpi eq, %arg2, %c0_i32_24 : i32
    %60 = arith.extui %59 : i1 to i32
    %c0_i32_25 = arith.constant 0 : i32
    %61 = arith.cmpi ne, %60, %c0_i32_25 : i32
    scf.if %61 {
      %c0_26 = arith.constant 0 : index
      %c0_27 = arith.constant 0 : index
      %62 = vector.load %arg10[%c0_26, %c0_27] : memref<4x128xf32, #tpu.memory_space<vmem>>, vector<4x128xf32>
      %c0_28 = arith.constant 0 : index
      %c0_29 = arith.constant 0 : index
      %c0_30 = arith.constant 0 : index
      %c0_31 = arith.constant 0 : index
      %63 = vector.load %arg5[%c0_28, %c0_29, %c0_30, %c0_31] : memref<1x1x4x128xf32, #tpu.memory_space<vmem>>, vector<1x1x4x128xf32>
      %64 = vector.shape_cast %63 : vector<1x1x4x128xf32> to vector<4x128xf32>
      %65 = vector.shape_cast %62 : vector<4x128xf32> to vector<1x1x4x128xf32>
      tpu.vector_store %arg5[%c0_28, %c0_29, %c0_30, %c0_31], %65 {strides = array<i32>} : memref<1x1x4x128xf32, #tpu.memory_space<vmem>>, vector<1x1x4x128xf32>,
      %c0_32 = arith.constant 0 : index
      %c0_33 = arith.constant 0 : index
      %66 = vector.load %arg11[%c0_32, %c0_33] : memref<4x128xf32, #tpu.memory_space<vmem>>, vector<4x128xf32>
      %c0_34 = arith.constant 0 : index
      %c0_35 = arith.constant 0 : index
      %c0_36 = arith.constant 0 : index
      %c0_37 = arith.constant 0 : index
      %67 = vector.load %arg6[%c0_34, %c0_35, %c0_36, %c0_37] : memref<1x1x4x128xf32, #tpu.memory_space<vmem>>, vector<1x1x4x128xf32>
      %68 = vector.shape_cast %67 : vector<1x1x4x128xf32> to vector<4x128xf32>
      %69 = vector.shape_cast %66 : vector<4x128xf32> to vector<1x1x4x128xf32>
      tpu.vector_store %arg6[%c0_34, %c0_35, %c0_36, %c0_37], %69 {strides = array<i32>} : memref<1x1x4x128xf32, #tpu.memory_space<vmem>>, vector<1x1x4x128xf32>,
      %c0_38 = arith.constant 0 : index
      %c0_39 = arith.constant 0 : index
      %70 = vector.load %arg8[%c0_38, %c0_39] : memref<1x128xf32, #tpu.memory_space<vmem>>, vector<1x128xf32>
      %c0_40 = arith.constant 0 : index
      %c0_41 = arith.constant 0 : index
      %c0_42 = arith.constant 0 : index
      %c0_43 = arith.constant 0 : index
      %71 = vector.load %arg7[%c0_40, %c0_41, %c0_42, %c0_43] : memref<1x1x2x128xf32, #tpu.memory_space<vmem>>, vector<1x1x1x128xf32>
      %72 = vector.shape_cast %71 : vector<1x1x1x128xf32> to vector<1x128xf32>
      %73 = vector.shape_cast %70 : vector<1x128xf32> to vector<1x1x1x128xf32>
      tpu.vector_store %arg7[%c0_40, %c0_41, %c0_42, %c0_43], %73 {strides = array<i32>} : memref<1x1x2x128xf32, #tpu.memory_space<vmem>>, vector<1x1x1x128xf32>,
      %c0_44 = arith.constant 0 : index
      %c0_45 = arith.constant 0 : index
      %74 = vector.load %arg9[%c0_44, %c0_45] : memref<1x128xf32, #tpu.memory_space<vmem>>, vector<1x128xf32>
      %c0_46 = arith.constant 0 : index
      %c0_47 = arith.constant 0 : index
      %c1 = arith.constant 1 : index
      %c0_48 = arith.constant 0 : index
      %75 = vector.load %arg7[%c0_46, %c0_47, %c1, %c0_48] : memref<1x1x2x128xf32, #tpu.memory_space<vmem>>, vector<1x1x1x128xf32>
      %76 = vector.shape_cast %75 : vector<1x1x1x128xf32> to vector<1x128xf32>
      %77 = vector.shape_cast %74 : vector<1x128xf32> to vector<1x1x1x128xf32>
      tpu.vector_store %arg7[%c0_46, %c0_47, %c1, %c0_48], %77 {strides = array<i32>} : memref<1x1x2x128xf32, #tpu.memory_space<vmem>>, vector<1x1x1x128xf32>,
    } else {
    }
    return
  }
  func.func @transform_0(%arg0: i32, %arg1: i32, %arg2: i32) -> (i32, i32, i32) {
    %c1_i32 = arith.constant 1 : i32
    %0 = arith.muli %arg1, %c1_i32 : i32
    %1 = arith.addi %0, %arg2 : i32
    %c0_i32 = arith.constant 0 : i32
    %c0_i32_0 = arith.constant 0 : i32
    return %arg0, %c0_i32, %1 : i32, i32, i32
  }
  func.func @transform_1(%arg0: i32, %arg1: i32, %arg2: i32) -> (i32, i32, i32) {
    %c1_i32 = arith.constant 1 : i32
    %0 = arith.muli %arg1, %c1_i32 : i32
    %1 = arith.addi %0, %arg2 : i32
    %c0_i32 = arith.constant 0 : i32
    %c0_i32_0 = arith.constant 0 : i32
    return %arg0, %c0_i32, %1 : i32, i32, i32
  }
  func.func @transform_2(%arg0: i32, %arg1: i32, %arg2: i32) -> (i32, i32, i32, i32) {
    %c0_i32 = arith.constant 0 : i32
    %c0_i32_0 = arith.constant 0 : i32
    %c0_i32_1 = arith.constant 0 : i32
    return %arg0, %arg1, %c0_i32, %c0_i32_0 : i32, i32, i32, i32
  }
  func.func @transform_3(%arg0: i32, %arg1: i32, %arg2: i32) -> (i32, i32, i32, i32) {
    %c0_i32 = arith.constant 0 : i32
    %c0_i32_0 = arith.constant 0 : i32
    %c0_i32_1 = arith.constant 0 : i32
    return %arg0, %arg1, %c0_i32, %c0_i32_0 : i32, i32, i32, i32
  }
  func.func @transform_4(%arg0: i32, %arg1: i32, %arg2: i32) -> (i32, i32, i32, i32) {
    %c0_i32 = arith.constant 0 : i32
    %c0_i32_0 = arith.constant 0 : i32
    %c0_i32_1 = arith.constant 0 : i32
    return %arg0, %arg1, %c0_i32, %c0_i32_0 : i32, i32, i32, i32
  }
}

</mosaic_0001>

<bundles_post_ra>
// kernel: tpu_custom_call.1
= control target key start
LH: loop header
LB: loop body
LE: loop exit
PB: predicated region body
PF: predicated region fallthrough
CT: control target
= control target key end

     0   :  { %10 = vsyncpa [#allocation7], 0  ;;  %s1442_s0 = inlined_call_operand.hbm [shape: f32[2,4,256], index: 0, kind: input, shape index: {}]   ;;  %s1443_s1 = inlined_call_operand.hbm [shape: s32[2,1,256], index: 1, kind: input, shape index: {}]   ;;  %s1444_s2 = inlined_call_operand.hbm [shape: f32[2,1,4,128], index: 2, kind: output, shape index: {0}]   ;;  %s1445_s3 = inlined_call_operand.hbm [shape: f32[2,1,4,128], index: 3, kind: output, shape index: {1}]   ;;  %s1446_s4 = inlined_call_operand.hbm [shape: f32[2,1,2,128], index: 4, kind: output, shape index: {2}]  }
   0x1   :  { %12 = vsyncpa [#allocation7 + $0x1], 0 }
   0x2   :  { %13 = vsyncpa [#allocation10], 0 }
   0x3   :  { %15 = vsyncpa [#allocation10 + $0x1], 0 }
   0x4   :  { %16 = vsyncpa [#allocation8], 0 }
   0x5   :  { %18 = vsyncpa [#allocation8 + $0x1], 0 }
   0x6   :  { %19 = vsyncpa [#allocation13], 0 }
   0x7   :  { %21 = vsyncpa [#allocation13 + $0x1], 0  ;;  %s1080_s15 = smov 0   ;;  %s1082_s16 = smov 0  }
   0x8   :  { %s1084_s17 = smov 0   ;;  %s1086_s18 = smov 0  }
   0x9   :  { %s1088_s19 = smov 0   ;;  %s1090_s20 = smov 0  }
   0xa LB: > { %s1111_s21 = sadd.s32 4294967295, %s1046_s20   ;;  %s1448_s22 = sadd.s32 4294967294, %s1046_s20   ;;  %s1046_s20 = sphi %s1090_s20, %s27_s20   ;;  %s1042_s19 = sphi %s1088_s19, %s1468_s19   ;;  %s1038_s18 = sphi %s1086_s18, %s1467_s18   ;;  %s1034_s17 = sphi %s1084_s17, %s1466_s17   ;;  %s1030_s16 = sphi %s1082_s16, %s1465_s16   ;;  %s1026_s15 = sphi %s1080_s15, %s1464_s15  }
   0xb   : > { %s46_s23 = sadd.s32 1, %s1042_s19  ;;  %s57_s24 = sadd.s32 1, %s1034_s17 }
   0xc   : > { %p48_p0 = scmp.ge.s32.totalorder %s46_s23, 2  ;;  %p64_p1 = scmp.ne.s32.totalorder %s1034_s17, %s1030_s16 }
   0xd   : > { %p65_p2 = scmp.eq.s32.totalorder %s1046_s20, 0  ;;  %p70_p3 = scmp.ne.s32.totalorder %s1030_s16, %s1026_s15 }
   0xe   : > { %s1470_s23 = smov (%p48_p0, %s46_s23), 0  ;;  %p71_p5 = scmp.eq.s32.totalorder %s1111_s21, 0 }
   0xf   : > { %p1123_p4 = por %p65_p2, %p64_p1  ;;  %s52_s26 = ssub.s32 %s1042_s19, %s1470_s23 }
  0x10   : > { %p126_p6 = scmp.eq.s32.totalorder %s1111_s21, 1  ;;  %p55_p7 = scmp.eq.s32.totalorder %s52_s26, 0 }
  0x11   : > { %p1131_p8 = por %p71_p5, %p70_p3  ;;  %p132_p10 = scmp.eq.s32.totalorder %s1448_s22, 1 }
  0x12   : > { %p1135_p9 = por %p126_p6, %p64_p1  ;;  %p777_p13 = scmp.lt.s32.totalorder %s1046_s20, 2 }
  0x13   : > { %s1451_s27 = scalar_select %p1131_p8, 1, 0 }
  0x14   : > { %s1452_s28 = scalar_select %p1135_p9, 1, 0 }
  0x15   : > { %s1142_s29 = scalar_select %p55_p7, %s1034_s17, %s57_s24  }
  0x16   : > { %p1144_p11 = por %p132_p10, %p70_p3  ;;  %s1151_s5 = sand.u32 1, %s1034_s17  }
  0x17   : > { %s725_s6 = sshll.u32 %s1151_s5, 3  ;;  %s748_s7 = sshll.u32 %s1042_s19, 7 }
  0x18   : > { %s1453_s30 = scalar_select %p1144_p11, 1, 0 }
  0x19   : > { %s1158_s10 = scalar_lea.hbm %s1442_s0, %s748_s7  ;;  %s212_s11 = scalar_lea.vmem [#allocation6], %s725_s6 }
  0x1a   : > { %s223_s12 = sshll.u32 %s212_s11, 4  ;;  %p1164_p0 = pnand %p777_p13, %p1123_p4  ;;  %s1160_s12 = int_to_ptr.vmem [resolvable:$true] %s223_s12 }
  0x1b   : > { %s209_s14 = scalar_lea.sflag [#allocation7], %s1151_s5  ;;  %s840_s24 = scalar_lea.hbm %s1158_s10, 128 }
  0x1c   : > { %p841_p3 = scmp.ne.s32.totalorder %s1158_s10, %s840_s24  ;;  %p842_p5 = pneg %p1164_p0 }
  0x1d   : > { %s845_s25 = scalar_lea.hbm %s1442_s0, 256  ;;  %p846_p4 = scmp.lt.u32.totalorder %s1158_s10, %s1442_s0 }
  0x1e   : > { %p843_p6 = pnand %p842_p5, %p841_p3  ;;  %p847_p10 = scmp.lt.u32.totalorder %s845_s25, %s840_s24 }
  0x1f   : > { %p849_p12 = scmp.lt.u32.totalorder %s840_s24, %s1158_s10 }
  0x20   : > { %p844_p7 = pneg %p843_p6  ;;  %p848_p13 = por %p847_p10, %p846_p4 }
  0x22   : > { %p850_p1 = por %p849_p12, %p848_p13 }
  0x24   : > { %p851_p2 = pnand %p850_p1, %p844_p7 }
  0x26   : > { %854 = shalt.err (!%p851_p2)
}
  0x27   : > { %s855_s9 = scalar_lea.vmem %s1160_s12, 128  ;;  %s1048_s11 = smov [#allocation6]  }
  0x28   : > { %p856_p3 = scmp.ne.s32.totalorder %s1160_s12, %s855_s9  ;;  %s860_s26 = sshll.u32 %s1048_s11, 4  ;;  %s861_s26 = int_to_ptr.vmem [resolvable:$false] %s860_s26 }
  0x29   : > { %s862_s6 = scalar_lea.vmem %s861_s26, 256  ;;  %p863_p9 = scmp.lt.s32.totalorder %s1160_s12, %s861_s26 }
  0x2a   : > { %p858_p6 = pnand %p856_p3, %p842_p5  ;;  %p864_p4 = scmp.lt.s32.totalorder %s862_s6, %s855_s9 }
  0x2c   : > { %p859_p11 = pneg %p858_p6  ;;  %p865_p10 = por %p864_p4, %p863_p9 }
  0x2e   : > { %p866_p12 = pnand %p865_p10, %p859_p11 }
  0x30   : > { %869 = shalt.err (!%p866_p12)
}
  0x31   : > { %763 = dma.hbm_to_vmem [thread:$0]  (!%p1164_p0), %s1158_s10, 128, %s1160_s12, %s209_s14  }
  0x32   : > { %p1455_p1 = scmp.lt.s32.totalorder %s1046_s20, 3  ;;  %p1456_p2 = scmp.ge.s32.totalorder %s1046_s20, 1 }
  0x33   : > { %s728_s25 = sshll.u32 %s1151_s5, 1  ;;  %s749_s7 = sshll.u32 %s1042_s19, 5 }
  0x34   : > { %p1200_p7 = pnand %p1456_p2, %p1455_p1  ;;  %s1209_s11 = scalar_lea.hbm %s1443_s1, %s749_s7 }
  0x35   : > { %s234_s26 = scalar_lea.vmem [#allocation9], %s728_s25  ;;  %s231_s10 = scalar_lea.sflag [#allocation10], %s1151_s5 }
  0x36   : > { %s1457_s24 = scalar_select %p1200_p7, 1, 0 }
  0x37   : > { %s245_s6 = sshll.u32 %s234_s26, 4  ;;  %s870_s12 = scalar_lea.hbm %s1209_s11, 32  ;;  %s246_s6 = int_to_ptr.vmem [resolvable:$true] %s245_s6 }
  0x38   : > { %p871_p9 = scmp.ne.s32.totalorder %s1209_s11, %s870_s12  ;;  %s875_s8 = scalar_lea.hbm %s1443_s1, 64 }
  0x39   : > { %p876_p3 = scmp.lt.u32.totalorder %s1209_s11, %s1443_s1  ;;  %p877_p6 = scmp.lt.u32.totalorder %s875_s8, %s870_s12 }
  0x3a   : > { %p873_p11 = pnand %p871_p9, %p842_p5  ;;  %p879_p10 = scmp.lt.u32.totalorder %s870_s12, %s1209_s11 }
  0x3b   : > { %p878_p4 = por %p877_p6, %p876_p3 }
  0x3c   : > { %p874_p13 = pneg %p873_p11 }
  0x3d   : > { %p880_p12 = por %p879_p10, %p878_p4 }
  0x3f   : > { %p881_p1 = pnand %p880_p12, %p874_p13 }
  0x41   : > { %884 = shalt.err (!%p881_p1)
}
  0x42   : > { %s885_s5 = scalar_lea.vmem %s246_s6, 32  ;;  %s1049_s25 = smov [#allocation9]  }
  0x43   : > { %p886_p2 = scmp.ne.s32.totalorder %s246_s6, %s885_s5  ;;  %s890_s22 = sshll.u32 %s1049_s25, 4  ;;  %s891_s22 = int_to_ptr.vmem [resolvable:$false] %s890_s22 }
  0x44   : > { %s892_s26 = scalar_lea.vmem %s891_s22, 64  ;;  %p893_p8 = scmp.lt.s32.totalorder %s246_s6, %s891_s22 }
  0x45   : > { %p888_p9 = pnand %p886_p2, %p842_p5  ;;  %p894_p7 = scmp.lt.s32.totalorder %s892_s26, %s885_s5 }
  0x47   : > { %p889_p11 = pneg %p888_p9  ;;  %p895_p3 = por %p894_p7, %p893_p8 }
  0x49   : > { %p896_p6 = pnand %p895_p3, %p889_p11 }
  0x4b   : > { %899 = shalt.err (!%p896_p6)
}
  0x4c   : > { %766 = dma.hbm_to_vmem [thread:$0]  (!%p1164_p0), %s1209_s11, 32, %s246_s6, %s231_s10  }
  0x4d   : > { %p1458_p13 = scmp.ne.s32.totalorder %s1457_s24, 0 }
  0x4e   : > { %s1234_s12 = sand.u32 (!%p1458_p13), 1, %s1030_s16   ;;  %p1459_p5 = scmp.ne.s32.totalorder (!%p1458_p13), %s1451_s27, 0 }
  0x4f   : > { %254 = sbr.rel (%p1458_p13) target bundleno = 223 (0xdf), region = 28  ;;  %s732_s14 = sshll.u32 (!%p1458_p13), %s1234_s12, 3 }
  0x50   : > { %s257_s8 = scalar_lea.sflag (!%p1458_p13), [#allocation7], %s1234_s12  ;;  %s260_s7 = scalar_lea.vmem (!%p1458_p13), [#allocation6], %s732_s14 }
  0x56   : > { %1009 = dma.done.wait (%p1459_p5), %s257_s8, 128  }
  0x57   : > { %1011 = vsyncadd (%p1459_p5), %s257_s8, 4294967168  ;;  %s733_s13 = sshll.u32 %s1234_s12, 1  ;;  %s266_s24 = scalar_lea.sflag [#allocation10], %s1234_s12 }
  0x58   : > { %s269_s11 = scalar_lea.vmem [#allocation9], %s733_s13 }
  0x59   : > { %1013 = dma.done.wait (%p1459_p5), %s266_s24, 32  }
  0x5a   : > { %1015 = vsyncadd (%p1459_p5), %s266_s24, 4294967264  ;;  %v326_v0 = vlaneseq  ;;  %v1050_v1 = vmov 0.0   ;;  %vm345_vm0 = vcmask 1043456   ;;  %v1258_v5 = vld [vmem:[%s260_s7] sm:$0xff]  ;;  %v322_v6 = vld [vmem:[%s269_s11] sm:$0x3] }
  0x5b   : > { %320 = vst [vmem:[#allocation5] sm:$0xf] %v1050_v1  ;;  %317 = vst [vmem:[#allocation2] sm:$0x1] %v1050_v1  ;;  %v343_v9 = vcombine.high %v1258_v5, %v1258_v5  ;;  %vm323_vm1 = vcmp.ne.s32.totalorder %v322_v6, 4294967196  ;;  %v346_v10 = vsel %vm345_vm0, %v1258_v5, -inf }
  0x5c   : > { %318 = vst [vmem:[#allocation3] sm:$0x1] %v1050_v1  ;;  %319 = vst [vmem:[#allocation4] sm:$0xf] %v1050_v1  ;;  %v1250_v2 = vshrl.u32 %v326_v0, 7  ;;  %v347_v11 = vrot.slane %v346_v10, 4 }
  0x5d   : > { %v353_v12 = vsel %vm345_vm0, %v343_v9, -inf  ;;  %v1273_v17 = vsel %vm323_vm1, 1.0, %v1050_v1  ;;  %s734_s27 = sshll.u32 %s1234_s12, 2  ;;  %s497_s9 = sand.u32 1, %s1111_s21  }
  0x5e   : > { %v1253_v3 = vsub.s32 0, %v1250_v2  ;;  %v1256_v4 = vsub.s32 1, %v1250_v2  ;;  %v354_v16 = vrot.slane %v353_v12, 4  ;;  %v348_v19 = vmax.f32 %v346_v10, %v347_v11  ;;  %s301_s6 = scalar_lea.vmem [#allocation12], %s734_s27  ;;  %s743_s5 = sshll.u32 %s1038_s18, 6 }
  0x5f   : > { %v432_v21 = vrot.slane %v1273_v17, 1  ;;  %s531_s10 = sshll.u32 %s301_s6, 4  ;;  %s1295_s26 = scalar_lea.hbm %s1445_s3, %s743_s5  ;;  %s1288_s10 = int_to_ptr.vmem [resolvable:$true] %s531_s10 }
  0x60   : > { %v331_v7 = vrot.slane %v322_v6, %v1253_v3  ;;  %v335_v8 = vrot.slane %v322_v6, %v1256_v4  ;;  %v355_v20 = vmax.f32 %v353_v12, %v354_v16  ;;  %v349_v23 = vrot.slane %v348_v19, 2  ;;  %s1300_s21 = scalar_lea.sflag [#allocation13], %s497_s9  ;;  %s900_s14 = scalar_lea.vmem %s1288_s10, 64 }
  0x61   : > { %v434_v26 = vadd.f32 %v1273_v17, %v432_v21  ;;  %p901_p8 = scmp.ne.s32.totalorder %s1288_s10, %s900_s14  ;;  %p1460_p0 = scmp.ne.s32.totalorder %s1452_s28, 0 }
  0x62   : > { %vm336_vm2 = vcmp.eq.s32.totalorder %v1250_v2, %v331_v7  ;;  %vm337_vm3 = vcmp.eq.s32.totalorder %v1250_v2, %v335_v8  ;;  %v477_v15 = vld [vmem:[#allocation5] sm:$0xf]  ;;  %v356_v25 = vrot.slane %v355_v20, 2  ;;  %v350_v27 = vmax.f32 %v348_v19, %v349_v23  ;;  %s1051_s8 = smov [#allocation12]  }
  0x63   : > { %v1269_v13 = vsel %vm336_vm2, 1.0, %v1050_v1  ;;  %v1271_v14 = vsel %vm337_vm3, 1.0, %v1050_v1  ;;  %v431_v24 = vld [vmem:[#allocation3] sm:$0x1]  ;;  %p902_p7 = pnand %p901_p8, %p1460_p0  ;;  %s904_s7 = sshll.u32 %s1051_s8, 4  ;;  %s905_s7 = int_to_ptr.vmem [resolvable:$false] %s904_s7 }
  0x64   : > { %v478_v18 = vadd.f32 %v1271_v14, %v1269_v13  ;;  %v357_v28 = vmax.f32 %v355_v20, %v356_v25  ;;  %v435_v29 = vadd.f32 %v434_v26, %v431_v24  ;;  %v351_v30 = vrot.slane %v350_v27, 1  ;;  %s906_s24 = scalar_lea.vmem %s905_s7, 128  ;;  %p907_p10 = scmp.lt.s32.totalorder %s1288_s10, %s905_s7 }
  0x65   : > { %p903_p4 = pneg %p902_p7  ;;  %p908_p12 = scmp.lt.s32.totalorder %s906_s24, %s900_s14 }
  0x66   : > { %v479_v22 = vadd.f32 %v478_v18, %v477_v15  ;;  %v358_v31 = vrot.slane %v357_v28, 1  ;;  %436 = vst [vmem:[#allocation3] sm:$0x1] %v435_v29  ;;  %v1284_v32 = vmax.f32 %v350_v27, %v351_v30 }
  0x67   : > { %p909_p1 = por %p908_p12, %p907_p10 }
  0x68   : > { %480 = vst [vmem:[#allocation5] sm:$0xf] %v479_v22  ;;  %v1286_v33 = vmax.f32 %v357_v28, %v358_v31 }
  0x69   : > { %p910_p2 = pnand %p909_p1, %p903_p4 }
  0x6a   : > { %v362_v34 = vcombine.low %v1284_v32, %v1286_v33 }
  0x6c   : > { %v364_v36 = vsub.f32 %v1258_v5, %v362_v34 }
  0x6f   : > { %v486_v35 = vld [vmem:[#allocation5] sm:$0xf] }
  0x70   : > { %487 = vst [vmem:[%s301_s6] sm:$0xf] %v486_v35 }
  0x71   : > { %913 = shalt.err (!%p910_p2)
}
  0x72   : > { %s914_s11 = scalar_lea.hbm %s1295_s26, 64  ;;  %s918_s25 = scalar_lea.hbm %s1445_s3, 128 }
  0x73   : > { %p915_p9 = scmp.ne.s32.totalorder %s1295_s26, %s914_s11  ;;  %p919_p6 = scmp.lt.u32.totalorder %s1295_s26, %s1445_s3 }
  0x74   : > { %p920_p13 = scmp.lt.u32.totalorder %s918_s25, %s914_s11  ;;  %p922_p8 = scmp.lt.u32.totalorder %s914_s11, %s1295_s26 }
  0x75   : > { %p916_p11 = pnand %p915_p9, %p1460_p0 }
  0x76   : > { %p921_p5 = por %p920_p13, %p919_p6 }
  0x77   : > { %p917_p3 = pneg %p916_p11 }
  0x78   : > { %p923_p7 = por %p922_p8, %p921_p5 }
  0x7a   : > { %p924_p4 = pnand %p923_p7, %p917_p3 }
  0x7c   : > { %927 = shalt.err (!%p924_p4)
}
  0x7d   : > { %755 = dma.vmem_to_hbm [thread:$0]  (%p1460_p0), %s1288_s10, 64, %s1295_s26, %s1300_s21   ;;  %v490_v37 = vld [vmem:[#allocation3] sm:$0x1]  ;;  %v365_v38 = vmul.f32 1.442695, %v364_v36  ;;  %v392_v39 = vcombine.low %v1269_v13, %v1271_v14  ;;  %v419_v23 = vrot.slane %v1273_v17, %v1253_v3  ;;  %v423_v27 = vrot.slane %v1273_v17, %v1256_v4 }
  0x7e   : > { %s1326_s14 = scalar_lea.vmem [#allocation14], %s733_s13  ;;  %v1052_v6 = vmov 1966171168   ;;  %v412_v34 = vld [vmem:[#allocation2] sm:$0x1]  ;;  %s745_s10 = sshll.u32 %s1038_s18, 5 }
  0x7f   : > { %491 = vst [vmem:[%s1326_s14 + $0x1] sm:$0x1] %v490_v37  ;;  %830 = vpow2.f32 %v365_v38  ;;  %v394_v40 = vmul.f32 %v392_v39, %v1258_v5  ;;  %v443_v7 = vunpack.c.l.s4 %v1052_v6  ;;  %s545_s13 = sshll.u32 %s1326_s14, 4  ;;  %s1359_s24 = scalar_lea.hbm %s1446_s4, %s745_s10  ;;  %s1354_s13 = int_to_ptr.vmem [resolvable:$true] %s545_s13 }
  0x80   : > { %s928_s11 = scalar_lea.vmem %s1354_s13, 32  ;;  %s1053_s6 = smov [#allocation14]  }
  0x81   : > { %v396_v42 = vcombine.high %v394_v40, %v394_v40  ;;  %v398_v45 = vsel %vm345_vm0, %v394_v40, 0.0  ;;  %v444_v10 = vunpack.c.0.s8 %v443_v7  ;;  %p929_p10 = scmp.ne.s32.totalorder %s1354_s13, %s928_s11  ;;  %s932_s9 = sshll.u32 %s1053_s6, 4  ;;  %s933_s9 = int_to_ptr.vmem [resolvable:$false] %s932_s9 }
  0x82   : > { %v399_v51 = vrot.slane %v398_v45, 4  ;;  %s934_s25 = scalar_lea.vmem %s933_s9, 64  ;;  %p935_p2 = scmp.lt.s32.totalorder %s1354_s13, %s933_s9 }
  0x83   : > { %v405_v48 = vsel %vm345_vm0, %v396_v42, 0.0  ;;  %v447_v18 = vsub.s32 %v444_v10, %v1250_v2  ;;  %v458_v42 = vld [vmem:[#allocation4] sm:$0xf]  ;;  %p930_p12 = pnand %p929_p10, %p1460_p0  ;;  %p936_p9 = scmp.lt.s32.totalorder %s934_s25, %s928_s11 }
  0x84   : > { %v406_v54 = vrot.slane %v405_v48, 4  ;;  %v400_v57 = vadd.f32 %v399_v51, %v398_v45 }
  0x85   : > { %p931_p1 = pneg %p930_p12  ;;  %p937_p11 = por %p936_p9, %p935_p2 }
  0x86   : > { %v407_v60 = vadd.f32 %v406_v54, %v405_v48  ;;  %v401_v63 = vrot.slane %v400_v57, 2 }
  0x87   : > { %p938_p3 = pnand %p937_p11, %p931_p1 }
  0x88   : > { %v408_v1 = vrot.slane %v407_v60, 2  ;;  %v402_v5 = vadd.f32 %v401_v63, %v400_v57 }
  0x89   : > { %v1332_v41 = vpop.eup %830 }
  0x8a   : > { %v368_v43 = vcombine.high %v1332_v41, %v1332_v41  ;;  %v370_v44 = vsel %vm345_vm0, %v1332_v41, 0.0  ;;  %v409_v8 = vadd.f32 %v408_v1, %v407_v60  ;;  %v403_v9 = vrot.slane %v402_v5, 1 }
  0x8b   : > { %v371_v46 = vrot.slane %v370_v44, 4 }
  0x8c   : > { %v377_v47 = vsel %vm345_vm0, %v368_v43, 0.0  ;;  %v410_v11 = vrot.slane %v409_v8, 1  ;;  %v404_v15 = vadd.f32 %v403_v9, %v402_v5 }
  0x8d   : > { %v372_v49 = vadd.f32 %v371_v46, %v370_v44  ;;  %v378_v50 = vrot.slane %v377_v47, 4 }
  0x8e   : > { %v411_v22 = vadd.f32 %v410_v11, %v409_v8 }
  0x8f   : > { %v373_v52 = vrot.slane %v372_v49, 2  ;;  %v379_v53 = vadd.f32 %v378_v50, %v377_v47 }
  0x91   : > { %v374_v55 = vadd.f32 %v373_v52, %v372_v49  ;;  %v380_v56 = vrot.slane %v379_v53, 2 }
  0x93   : > { %v375_v58 = vrot.slane %v374_v55, 1  ;;  %v381_v59 = vadd.f32 %v380_v56, %v379_v53 }
  0x95   : > { %v376_v61 = vadd.f32 %v375_v58, %v374_v55  ;;  %v382_v62 = vrot.slane %v381_v59, 1 }
  0x97   : > { %v383_v0 = vadd.f32 %v382_v62, %v381_v59  ;;  %832 = vlog2.f32 %v376_v61 }
  0x98   : > { %834 = vrcp.f32 %v376_v61 }
  0x99   : > { %836 = vlog2.f32 %v383_v0 }
  0x9a   : > { %838 = vrcp.f32 %v383_v0 }
  0xa1   : > { %v833_v12 = vpop.eup %832 }
  0xa2   : > { %v835_v13 = vpop.eup %834  ;;  %v385_v14 = vmul.f32 0.6931472, %v833_v12 }
  0xa3   : > { %v837_v16 = vpop.eup %836 }
  0xa4   : > { %v839_v19 = vpop.eup %838  ;;  %v387_v20 = vmul.f32 0.6931472, %v837_v16  ;;  %v388_v21 = vadd.f32 %v385_v14, %v1284_v32 }
  0xa5   : > { %v441_v24 = vcombine.low %v835_v13, %v839_v19 }
  0xa6   : > { %v389_v25 = vadd.f32 %v387_v20, %v1286_v33  ;;  %v413_v26 = vsub.f32 %v388_v21, %v404_v15 }
  0xa7   : > { %v448_v28 = vrot.slane %v441_v24, %v447_v18 }
  0xa8   : > { %v414_v29 = vsub.f32 %v389_v25, %v411_v22  ;;  %v426_v2 = vmul.f32 %v419_v23, %v413_v26 }
  0xa9   : > { %v455_v30 = vrot.slane %v448_v28, %v447_v18 }
  0xaa   : > { %v427_v31 = vmul.f32 %v423_v27, %v414_v29 }
  0xab   : > { %v457_v32 = vmul.f32 %v1273_v17, %v455_v30 }
  0xac   : > { %v428_v35 = vadd.f32 %v427_v31, %v426_v2 }
  0xad   : > { %v463_v36 = vrot.slane %v457_v32, %v1253_v3  ;;  %v467_v33 = vrot.slane %v457_v32, %v1256_v4 }
  0xae   : > { %v429_v37 = vadd.f32 %v428_v35, %v412_v34 }
  0xaf   : > { %v468_v38 = vcombine.low %v463_v36, %v467_v33 }
  0xb0   : > { %430 = vst [vmem:[#allocation2] sm:$0x1] %v429_v37 }
  0xb1   : > { %v470_v39 = vmul.f32 %v1332_v41, %v468_v38 }
  0xb3   : > { %v472_v40 = vrot.slane %v470_v39, 4 }
  0xb5   : > { %v474_v43 = vadd.f32 %v472_v40, %v470_v39 }
  0xb7   : > { %v475_v3 = vadd.f32 %v474_v43, %v458_v42  ;;  %v488_v4 = vld [vmem:[#allocation2] sm:$0x1] }
  0xb8   : > { %489 = vst [vmem:[%s1326_s14] sm:$0x1] %v488_v4 }
  0xb9   : > { %476 = vst [vmem:[#allocation4] sm:$0xf] %v475_v3 }
  0xba   : > { %941 = shalt.err (!%p938_p3)
}
  0xbb   : > { %s942_s22 = scalar_lea.hbm %s1359_s24, 32  ;;  %s946_s10 = scalar_lea.hbm %s1446_s4, 64 }
  0xbc   : > { %p943_p6 = scmp.ne.s32.totalorder %s1359_s24, %s942_s22  ;;  %p947_p8 = scmp.lt.u32.totalorder %s1359_s24, %s1446_s4 }
  0xbd   : > { %p948_p7 = scmp.lt.u32.totalorder %s946_s10, %s942_s22  ;;  %p950_p10 = scmp.lt.u32.totalorder %s942_s22, %s1359_s24 }
  0xbe   : > { %p944_p13 = pnand %p943_p6, %p1460_p0 }
  0xbf   : > { %p949_p4 = por %p948_p7, %p947_p8 }
  0xc0   : > { %p945_p5 = pneg %p944_p13 }
  0xc1   : > { %p951_p12 = por %p950_p10, %p949_p4 }
  0xc3   : > { %p952_p1 = pnand %p951_p12, %p945_p5 }
  0xc5   : > { %955 = shalt.err (!%p952_p1)
}
  0xc6   : > { %756 = dma.vmem_to_hbm [thread:$0]  (%p1460_p0), %s1354_s13, 32, %s1359_s24, %s1300_s21   ;;  %v484_v17 = vld [vmem:[#allocation4] sm:$0xf] }
  0xc7   : > { %s294_s11 = scalar_lea.vmem [#allocation11], %s734_s27  ;;  %s1393_s22 = scalar_lea.hbm %s1444_s2, %s743_s5 }
  0xc8   : > { %s517_s6 = sshll.u32 %s294_s11, 4  ;;  %485 = vst [vmem:[%s294_s11] sm:$0xf] %v484_v17  ;;  %s493_s8 = scalar_lea.sflag [#allocation8], %s1234_s12  ;;  %s1386_s6 = int_to_ptr.vmem [resolvable:$true] %s517_s6 }
  0xc9   : > { %s956_s14 = scalar_lea.vmem %s1386_s6, 64  ;;  %s1054_s27 = smov [#allocation11]  }
  0xca   : > { %p957_p2 = scmp.ne.s32.totalorder %s1386_s6, %s956_s14  ;;  %s960_s21 = sshll.u32 %s1054_s27, 4  ;;  %s961_s21 = int_to_ptr.vmem [resolvable:$false] %s960_s21 }
  0xcb   : > { %s962_s18 = scalar_lea.vmem %s961_s21, 128  ;;  %p963_p3 = scmp.lt.s32.totalorder %s1386_s6, %s961_s21 }
  0xcc   : > { %p958_p9 = pnand %p957_p2, %p1460_p0  ;;  %p964_p6 = scmp.lt.s32.totalorder %s962_s18, %s956_s14 }
  0xce   : > { %p959_p11 = pneg %p958_p9  ;;  %p965_p13 = por %p964_p6, %p963_p3 }
  0xd0   : > { %p966_p5 = pnand %p965_p13, %p959_p11 }
  0xd2   : > { %969 = shalt.err (!%p966_p5)
}
  0xd3   : > { %s970_s12 = scalar_lea.hbm %s1393_s22, 64  ;;  %s974_s24 = scalar_lea.hbm %s1444_s2, 128 }
  0xd4   : > { %p971_p8 = scmp.ne.s32.totalorder %s1393_s22, %s970_s12  ;;  %p975_p10 = scmp.lt.u32.totalorder %s1393_s22, %s1444_s2 }
  0xd5   : > { %p976_p12 = scmp.lt.u32.totalorder %s974_s24, %s970_s12  ;;  %p978_p2 = scmp.lt.u32.totalorder %s970_s12, %s1393_s22 }
  0xd6   : > { %p972_p7 = pnand %p971_p8, %p1460_p0 }
  0xd7   : > { %p977_p1 = por %p976_p12, %p975_p10 }
  0xd8   : > { %p973_p4 = pneg %p972_p7 }
  0xd9   : > { %p979_p9 = por %p978_p2, %p977_p1 }
  0xdb   : > { %p980_p11 = pnand %p979_p9, %p973_p4 }
  0xdd   : > { %983 = shalt.err (!%p980_p11)
}
  0xde   : > { %754 = dma.vmem_to_hbm [thread:$0]  (%p1460_p0), %s1386_s6, 64, %s1393_s22, %s493_s8  }
  0xdf PF: > { %s557_s7 = sand.u32 1, %s1026_s15   ;;  %p1461_p3 = scmp.ne.s32.totalorder %s1453_s30, 0 }
  0xe0   : > { %p1462_p6 = scmp.ge.s32.totalorder %s1046_s20, 2  ;;  %s558_s11 = scalar_lea.sflag [#allocation8], %s557_s7 }
  0xe2   : > { %p768_p13 = pnand %p1462_p6, %p1461_p3 }
  0xe4   : > { %1017 = dma.done.wait (!%p768_p13), %s558_s11, 64  }
  0xe5   : > { %1019 = vsyncadd (!%p768_p13), %s558_s11, 4294967232  ;;  %s1463_s9 = sadd.s32 4294967294, %s1046_s20  }
  0xe6   : > { %s566_s25 = sand.u32 1, %s1463_s9  }
  0xe7   : > { %s567_s14 = scalar_lea.sflag [#allocation13], %s566_s25 }
  0xe8   : > { %1021 = dma.done.wait (!%p768_p13), %s567_s14, 96  }
  0xe9   : > { %1023 = vsyncadd (!%p768_p13), %s567_s14, 4294967200  ;;  %s27_s20 = sadd.s32 1, %s1046_s20   ;;  %s1464_s15 = smov %s1030_s16 }
  0xea   : > { %p24_p0 = scmp.ge.s32.totalorder %s27_s20, 4   ;;  %s1465_s16 = smov %s1034_s17 }
  0xeb   : > { %s1466_s17 = smov %s1142_s29  ;;  %s1467_s18 = smov %s1042_s19 }
  0xec   : > { %s1468_s19 = smov %s1470_s23  ;;  %26 = sbr.rel (!%p24_p0) target bundleno = 10 (0xa), region = 126 }
  0xf3   :  { %581 = vsyncpa [#allocation7], 1 }
  0xf4   :  { %583 = vsyncpa [#allocation7 + $0x1], 1 }
  0xf5   :  { %584 = vsyncpa [#allocation10], 1 }
  0xf6   :  { %586 = vsyncpa [#allocation10 + $0x1], 1 }
  0xf7   :  { %587 = vsyncpa [#allocation8], 1 }
  0xf8   :  { %589 = vsyncpa [#allocation8 + $0x1], 1 }
  0xf9   :  { %590 = vsyncpa [#allocation13], 1 }
  0xfa   :  { %592 = vsyncpa [#allocation13 + $0x1], 1 }

</bundles_post_ra>
